<compile_context>
chip_gen: v7x
topology: tpu7x:2x2x1
jax: 0.10.0
libtpu: 0.0.40
codegen_flags: <defaults>
</compile_context>

<pallas_src>
import functools

import jax
import jax.numpy as jnp
from jax.experimental import pallas as pl
from jax.experimental.pallas import tpu as pltpu


_LANE = 128            # K / Cout padded to lane multiples (MXU alignment)
_TM_MAX = 256          # row-tile cap (VMEM discipline; re-derive for real WRN widths)
_MIN_ROW_STEPS = 4     # target >= 4 grid steps (v7x megacore + pipelining)
_BN_EPS = 1e-5
_VMEM_LIMIT_BYTES = 32 * 1024 * 1024   # safe on v5e/v6e/v7x at these tile sizes

# im2col tap order: centre tap first, so the fused 1x1 shortcut reads a
# lane-aligned prefix of the patch matrix (no relayout, no widened matmul).
_TAPS = ((1, 1), (0, 0), (0, 1), (0, 2), (1, 0), (1, 2), (2, 0), (2, 1), (2, 2))


def _round_up(x, m):
    return ((x + m - 1) // m) * m


# ----------------------------- Pallas kernels ------------------------------ #

def _convA_kernel(p_ref, w_ref, b_ref, o_ref):
    # out1 = relu(conv1(h) + bn2_shift); bn2 scale is pre-folded into w_ref.
    acc = jnp.dot(p_ref[...], w_ref[...], preferred_element_type=jnp.float32)
    o_ref[...] = jnp.maximum(acc + b_ref[...], 0.0).astype(o_ref.dtype)


def _convA_shortcut_kernel(cin_pad, p_ref, w_ref, b_ref, wsc_ref, o_ref, sc_ref):
    # Main 3x3 conv + bn2 + relu, plus the 1x1-conv shortcut as a second small
    # dot over the centre-tap prefix columns of the same patch tile.
    p = p_ref[...]
    acc = jnp.dot(p, w_ref[...], preferred_element_type=jnp.float32)
    o_ref[...] = jnp.maximum(acc + b_ref[...], 0.0).astype(o_ref.dtype)
    sc_ref[...] = jnp.dot(p[:, :cin_pad], wsc_ref[...],
                          preferred_element_type=jnp.float32)


def _convB_kernel(p_ref, w_ref, r_ref, o_ref):
    # out = residual + conv2(y); residual buffer is aliased to the output.
    o_ref[...] = r_ref[...] + jnp.dot(p_ref[...], w_ref[...],
                                      preferred_element_type=jnp.float32)


# ------------------------------ Wrappers ------------------------------------ #

def _row_tiles(m):
    # >= _MIN_ROW_STEPS grid steps when m allows; tile multiple of 16 (bf16 sublane
    # packing), capped at _TM_MAX for VMEM discipline.
    tm = max(16, min(_TM_MAX, _round_up(-(-m // _MIN_ROW_STEPS), 16)))
    return tm, _round_up(m, tm)


def _pad2d(a, rows, cols):
    pr, pc = rows - a.shape[0], cols - a.shape[1]
    if pr == 0 and pc == 0:
        return a
    return jnp.pad(a, ((0, pr), (0, pc)))


def _im2col(x, stride):
    """x: (N,H,W,C) -> (N*Ho*Wo, 9*C) for a 3x3 / pad-1 conv, taps in _TAPS order."""
    N, H, W, C = x.shape
    xp = jnp.pad(x, ((0, 0), (1, 1), (1, 1), (0, 0)))
    Ho = (H + 2 - 3) // stride + 1
    Wo = (W + 2 - 3) // stride + 1
    cols = [xp[:, i:i + stride * Ho:stride, j:j + stride * Wo:stride, :]
            for (i, j) in _TAPS]
    patches = jnp.concatenate(cols, axis=-1)            # (N, Ho, Wo, 9*C)
    return patches.reshape(N * Ho * Wo, 9 * C), Ho, Wo


def _convA_call(patches, w, b2, wsc):
    M, _ = patches.shape
    Kp, Cp = w.shape
    tm, Mp = _row_tiles(M)
    p = _pad2d(patches, Mp, Kp)                          # bf16

    row_spec = pl.BlockSpec((tm, Kp), lambda i: (i, 0))
    w_spec = pl.BlockSpec((Kp, Cp), lambda i: (0, 0))
    b_spec = pl.BlockSpec((1, Cp), lambda i: (0, 0))
    out_spec = pl.BlockSpec((tm, Cp), lambda i: (i, 0))
    cparams = pltpu.CompilerParams(dimension_semantics=("parallel",),
                                   vmem_limit_bytes=_VMEM_LIMIT_BYTES)
    grid = (Mp // tm,)

    if wsc is None:
        out1 = pl.pallas_call(
            _convA_kernel,
            out_shape=jax.ShapeDtypeStruct((Mp, Cp), jnp.bfloat16),
            grid=grid, in_specs=[row_spec, w_spec, b_spec], out_specs=out_spec,
            compiler_params=cparams,
        )(p, w, b2)
        return out1, None

    cin_pad = wsc.shape[0]
    out1, sc = pl.pallas_call(
        functools.partial(_convA_shortcut_kernel, cin_pad),
        out_shape=(jax.ShapeDtypeStruct((Mp, Cp), jnp.bfloat16),
                   jax.ShapeDtypeStruct((Mp, Cp), jnp.float32)),
        grid=grid,
        in_specs=[row_spec, w_spec, b_spec,
                  pl.BlockSpec((cin_pad, Cp), lambda i: (0, 0))],
        out_specs=(out_spec, out_spec),
        compiler_params=cparams,
    )(p, w, b2, wsc)
    return out1, sc


def _convB_call(patches, w, residual):
    M, _ = patches.shape
    Kp, Cp = w.shape
    tm, Mp = _row_tiles(M)
    p = _pad2d(patches, Mp, Kp)                          # bf16
    r = _pad2d(residual, Mp, Cp)                         # f32 (matches output dtype)
    return pl.pallas_call(
        _convB_kernel,
        out_shape=jax.ShapeDtypeStruct((Mp, Cp), jnp.float32),
        grid=(Mp // tm,),
        in_specs=[pl.BlockSpec((tm, Kp), lambda i: (i, 0)),
                  pl.BlockSpec((Kp, Cp), lambda i: (0, 0)),
                  pl.BlockSpec((tm, Cp), lambda i: (i, 0))],
        out_specs=pl.BlockSpec((tm, Cp), lambda i: (i, 0)),
        input_output_aliases={2: 0},          # residual buffer -> output buffer
        compiler_params=pltpu.CompilerParams(
            dimension_semantics=("parallel",),
            vmem_limit_bytes=_VMEM_LIMIT_BYTES),
    )(p, w, r)


# ----------------------- Parameter init & forward --------------------------- #

def _he_normal(key, kh, kw, cin, cout):
    # WideResNet convention: std = sqrt(2 / (k*k*out_channels))
    w = jax.random.normal(key, (kh, kw, cin, cout), jnp.float32)
    return w * jnp.sqrt(2.0 / (kh * kw * cout))


def _bn_scale_shift(c):
    # Fresh nn.BatchNorm2d (eval): gamma=1, beta=0, running_mean=0, running_var=1
    gamma = jnp.ones((c,), jnp.float32)
    beta = jnp.zeros((c,), jnp.float32)
    mean = jnp.zeros((c,), jnp.float32)
    var = jnp.ones((c,), jnp.float32)
    scale = gamma / jnp.sqrt(var + _BN_EPS)
    shift = beta - mean * scale
    return scale, shift


def _flatten_taps(w):
    # (3,3,Cin,Cout) -> (9*Cin, Cout) in _TAPS order (centre-tap rows first).
    return jnp.concatenate([w[i, j] for (i, j) in _TAPS], axis=0)


def init_network_block(key, nb_layers, in_planes, out_planes, stride):
    layers = []
    for i in range(nb_layers):
        ip = in_planes if i == 0 else out_planes
        st = stride if i == 0 else 1
        equal = ip == out_planes
        if equal and st != 1:
            # PyTorch's BasicBlock identity shortcut would also shape-error here.
            raise ValueError("identity shortcut requires stride == 1")
        key, k1, k2, k3 = jax.random.split(key, 4)

        kp1 = _round_up(9 * ip, _LANE)
        kp2 = _round_up(9 * out_planes, _LANE)
        cp = _round_up(out_planes, _LANE)
        cinp = _round_up(ip, _LANE)

        bn1_s, bn1_b = _bn_scale_shift(ip)
        bn2_s, bn2_b = _bn_scale_shift(out_planes)

        w1 = _he_normal(k1, 3, 3, ip, out_planes)
        # Fold bn2's scale into conv1's output channels (bn2 follows the conv
        # linearly); kernel-A epilogue is then just relu(acc + bn2_shift).
        w1f = _flatten_taps(w1 * bn2_s[None, None, None, :])
        w1m = jnp.zeros((kp1, cp), jnp.float32).at[:9 * ip, :out_planes].set(w1f)

        w2 = _he_normal(k2, 3, 3, out_planes, out_planes)
        w2m = jnp.zeros((kp2, cp), jnp.float32).at[
            :9 * out_planes, :out_planes].set(_flatten_taps(w2))

        p = {
            "stride": st, "equal": equal,
            "in_planes": ip, "out_planes": out_planes,
            # bn1 applied (f32) in the wrapper prologue; fuses into XLA's
            # im2col gather, so no pad-mask and no extra HBM round trip.
            "bn1_scale": bn1_s, "bn1_shift": bn1_b,
            # bf16 MXU operands (f32 accumulation happens in-kernel)
            "wA": w1m.astype(jnp.bfloat16),
            "b2": jnp.pad(bn2_b, (0, cp - out_planes)).reshape(1, cp),
            "w2": w2m.astype(jnp.bfloat16),
            # f32 copies for the pure-JAX reference check only
            "ref_w1": w1, "ref_w2": w2,
            "ref_bn1_scale": bn1_s, "ref_bn1_shift": bn1_b,
            "ref_bn2_scale": bn2_s, "ref_bn2_shift": bn2_b,
        }
        if not equal:
            wsc = _he_normal(k3, 1, 1, ip, out_planes).reshape(ip, out_planes)
            wscm = jnp.zeros((cinp, cp), jnp.float32).at[:ip, :out_planes].set(wsc)
            p["wsc"] = wscm.astype(jnp.bfloat16)
            p["ref_wsc"] = wsc.reshape(1, 1, ip, out_planes)
        layers.append(p)
    return layers


def basic_block_forward(x, p):
    """One WideResNet BasicBlock. x: (N,H,W,Cin) NHWC f32 -> (N,Ho,Wo,Cout) f32."""
    N, H, W, Cin = x.shape
    Cout = p["out_planes"]
    stride = p["stride"]

    # h = relu(bn1(x)) in f32, cast once to bf16 before the im2col gather; the
    # zero spatial padding of h is therefore exact (no pad-mask needed).
    h = jnp.maximum(x * p["bn1_scale"] + p["bn1_shift"], 0.0).astype(jnp.bfloat16)
    patches1, Ho, Wo = _im2col(h, stride)
    M = N * Ho * Wo

    out1, sc = _convA_call(patches1, p["wA"], p["b2"], p.get("wsc"))
    if p["equal"]:
        residual = x.reshape(M, Cout)          # identity shortcut (stride == 1)
    else:
        residual = sc                          # fused 1x1-conv shortcut (f32)

    out1_img = out1[:M, :Cout].reshape(N, Ho, Wo, Cout)        # bf16
    patches2, _, _ = _im2col(out1_img, 1)
    out = _convB_call(patches2, p["w2"], residual)
    return out[:M, :Cout].reshape(N, Ho, Wo, Cout)


def network_block_forward(x_nchw, layers):
    """x_nchw: (N,C,H,W) like the PyTorch module. Returns NCHW output."""
    x = jnp.transpose(x_nchw, (0, 2, 3, 1))    # NCHW -> NHWC
    for p in layers:
        x = basic_block_forward(x, p)
    return jnp.transpose(x, (0, 3, 1, 2))      # NHWC -> NCHW


# ------------------------- Pure-JAX reference (f32) ------------------------- #

def _reference_block(x, p):
    def conv(h, w, stride, pad):
        return jax.lax.conv_general_dilated(
            h, w, (stride, stride), [(pad, pad), (pad, pad)],
            dimension_numbers=("NHWC", "HWIO", "NHWC"),
            precision=jax.lax.Precision.HIGHEST)
    h = jnp.maximum(x * p["ref_bn1_scale"] + p["ref_bn1_shift"], 0.0)
    short = x if p["equal"] else conv(h, p["ref_wsc"], p["stride"], 0)
    y = conv(h, p["ref_w1"], p["stride"], 1)
    y = jnp.maximum(y * p["ref_bn2_scale"] + p["ref_bn2_shift"], 0.0)
    y = conv(y, p["ref_w2"], 1, 1)
    return short + y


# --------------------------------- main -------------------------------------- #

if __name__ == "__main__":
    key = jax.random.PRNGKey(0)
    kx, kp = jax.random.split(key)

    # NetworkBlock(nb_layers=2, in_planes=4, out_planes=8, block=BasicBlock, stride=2)
    nb_layers, in_planes, out_planes, stride = 2, 4, 8, 2
    layers = init_network_block(kp, nb_layers, in_planes, out_planes, stride)

    x = jax.random.normal(kx, (2, in_planes, 16, 16), jnp.float32)  # NCHW

    fwd = jax.jit(functools.partial(network_block_forward, layers=layers))
    y = fwd(x)
    jax.block_until_ready(y)

    expected_shape = (2, out_planes, 16 // stride, 16 // stride)
    assert y.shape == expected_shape, (y.shape, expected_shape)
    assert bool(jnp.all(jnp.isfinite(y)))

    # Numerical check vs a pure-JAX f32 reference (kernel streams bf16 MXU
    # operands with f32 accumulation, hence the loose relative tolerance).
    ref = jnp.transpose(x, (0, 2, 3, 1))
    for p in layers:
        ref = _reference_block(ref, p)
    ref = jnp.transpose(ref, (0, 3, 1, 2))
    err = float(jnp.max(jnp.abs(y - ref)))
    tol = 0.05 * max(1.0, float(jnp.max(jnp.abs(ref))))
    assert err <= tol, (err, tol)

    print("KERNEL_OK")
</pallas_src>

<mosaic_0001>
module attributes {stable_mosaic.version = 11 : i64} {
  func.func @_convA_shortcut_kernel(%arg0: i32, %arg1: memref<32x128xbf16, #tpu.memory_space<vmem>>, %arg2: memref<128x128xbf16, #tpu.memory_space<vmem>>, %arg3: memref<1x128xf32, #tpu.memory_space<vmem>>, %arg4: memref<128x128xbf16, #tpu.memory_space<vmem>>, %arg5: memref<32x128xbf16, #tpu.memory_space<vmem>>, %arg6: memref<32x128xf32, #tpu.memory_space<vmem>>) attributes {dimension_semantics = [#tpu.dimension_semantics<parallel>], iteration_bounds = array<i64: 4>, scalar_prefetch = 0 : i64, scratch_operands = 0 : i64, tpu.core_type = #tpu.core_type<tc>, window_params = [{transform_indices = @transform_0, window_bounds = array<i64: 32, 128>}, {pipeline_mode = #tpu.pipeline_mode<synchronous>, transform_indices = @transform_1, window_bounds = array<i64: 128, 128>}, {pipeline_mode = #tpu.pipeline_mode<synchronous>, transform_indices = @transform_2, window_bounds = array<i64: 1, 128>}, {pipeline_mode = #tpu.pipeline_mode<synchronous>, transform_indices = @transform_3, window_bounds = array<i64: 128, 128>}, {transform_indices = @transform_4, window_bounds = array<i64: 32, 128>}, {transform_indices = @transform_5, window_bounds = array<i64: 32, 128>}]} {
    %c0 = arith.constant 0 : index
    %c0_0 = arith.constant 0 : index
    %0 = vector.load %arg1[%c0, %c0_0] : memref<32x128xbf16, #tpu.memory_space<vmem>>, vector<32x128xbf16>
    %c0_1 = arith.constant 0 : index
    %c0_2 = arith.constant 0 : index
    %1 = vector.load %arg2[%c0_1, %c0_2] : memref<128x128xbf16, #tpu.memory_space<vmem>>, vector<128x128xbf16>
    %cst = arith.constant dense<0.000000e+00> : vector<32x128xf32>
    %2 = tpu.matmul %0, %1, %cst {dimension_numbers = #tpu.dot_dimension_numbers<[1], [0], [0], [1], [0, 0, 1, 1], [], []>} : vector<32x128xbf16>, vector<128x128xbf16>, vector<32x128xf32> -> vector<32x128xf32>
    %c0_3 = arith.constant 0 : index
    %c0_4 = arith.constant 0 : index
    %3 = vector.load %arg3[%c0_3, %c0_4] : memref<1x128xf32, #tpu.memory_space<vmem>>, vector<1x128xf32>
    %4 = vector.broadcast %3 : vector<1x128xf32> to vector<32x128xf32>
    %5 = arith.addf %2, %4 : vector<32x128xf32>
    %cst_5 = arith.constant 0.000000e+00 : f32
    %6 = vector.broadcast %cst_5 : f32 to vector<32x128xf32>
    %7 = arith.maximumf %5, %6 : vector<32x128xf32>
    %8 = arith.truncf %7 : vector<32x128xf32> to vector<32x128xbf16>
    %c0_6 = arith.constant 0 : index
    %c0_7 = arith.constant 0 : index
    %9 = vector.load %arg5[%c0_6, %c0_7] : memref<32x128xbf16, #tpu.memory_space<vmem>>, vector<32x128xbf16>
    tpu.vector_store %arg5[%c0_6, %c0_7], %8 {strides = array<i32>} : memref<32x128xbf16, #tpu.memory_space<vmem>>, vector<32x128xbf16>,
    %c0_8 = arith.constant 0 : index
    %c0_9 = arith.constant 0 : index
    %10 = vector.load %arg4[%c0_8, %c0_9] : memref<128x128xbf16, #tpu.memory_space<vmem>>, vector<128x128xbf16>
    %cst_10 = arith.constant dense<0.000000e+00> : vector<32x128xf32>
    %11 = tpu.matmul %0, %10, %cst_10 {dimension_numbers = #tpu.dot_dimension_numbers<[1], [0], [0], [1], [0, 0, 1, 1], [], []>} : vector<32x128xbf16>, vector<128x128xbf16>, vector<32x128xf32> -> vector<32x128xf32>
    %c0_11 = arith.constant 0 : index
    %c0_12 = arith.constant 0 : index
    %12 = vector.load %arg6[%c0_11, %c0_12] : memref<32x128xf32, #tpu.memory_space<vmem>>, vector<32x128xf32>
    tpu.vector_store %arg6[%c0_11, %c0_12], %11 {strides = array<i32>} : memref<32x128xf32, #tpu.memory_space<vmem>>, vector<32x128xf32>,
    return
  }
  func.func @transform_0(%arg0: i32) -> (i32, i32) {
    %c0_i32 = arith.constant 0 : i32
    %c0_i32_0 = arith.constant 0 : i32
    return %arg0, %c0_i32 : i32, i32
  }
  func.func @transform_1(%arg0: i32) -> (i32, i32) {
    %c0_i32 = arith.constant 0 : i32
    %c0_i32_0 = arith.constant 0 : i32
    %c0_i32_1 = arith.constant 0 : i32
    return %c0_i32, %c0_i32_0 : i32, i32
  }
  func.func @transform_2(%arg0: i32) -> (i32, i32) {
    %c0_i32 = arith.constant 0 : i32
    %c0_i32_0 = arith.constant 0 : i32
    %c0_i32_1 = arith.constant 0 : i32
    return %c0_i32, %c0_i32_0 : i32, i32
  }
  func.func @transform_3(%arg0: i32) -> (i32, i32) {
    %c0_i32 = arith.constant 0 : i32
    %c0_i32_0 = arith.constant 0 : i32
    %c0_i32_1 = arith.constant 0 : i32
    return %c0_i32, %c0_i32_0 : i32, i32
  }
  func.func @transform_4(%arg0: i32) -> (i32, i32) {
    %c0_i32 = arith.constant 0 : i32
    %c0_i32_0 = arith.constant 0 : i32
    return %arg0, %c0_i32 : i32, i32
  }
  func.func @transform_5(%arg0: i32) -> (i32, i32) {
    %c0_i32 = arith.constant 0 : i32
    %c0_i32_0 = arith.constant 0 : i32
    return %arg0, %c0_i32 : i32, i32
  }
}

module attributes {stable_mosaic.version = 11 : i64} {
  func.func @_convB_kernel(%arg0: i32, %arg1: memref<32x128xbf16, #tpu.memory_space<vmem>>, %arg2: memref<128x128xbf16, #tpu.memory_space<vmem>>, %arg3: memref<32x128xf32, #tpu.memory_space<vmem>>, %arg4: memref<32x128xf32, #tpu.memory_space<vmem>>) attributes {dimension_semantics = [#tpu.dimension_semantics<parallel>], iteration_bounds = array<i64: 4>, scalar_prefetch = 0 : i64, scratch_operands = 0 : i64, tpu.core_type = #tpu.core_type<tc>, window_params = [{transform_indices = @transform_0, window_bounds = array<i64: 32, 128>}, {pipeline_mode = #tpu.pipeline_mode<synchronous>, transform_indices = @transform_1, window_bounds = array<i64: 128, 128>}, {transform_indices = @transform_2, window_bounds = array<i64: 32, 128>}, {transform_indices = @transform_3, window_bounds = array<i64: 32, 128>}]} {
    %c0 = arith.constant 0 : index
    %c0_0 = arith.constant 0 : index
    %0 = vector.load %arg3[%c0, %c0_0] : memref<32x128xf32, #tpu.memory_space<vmem>>, vector<32x128xf32>
    %c0_1 = arith.constant 0 : index
    %c0_2 = arith.constant 0 : index
    %1 = vector.load %arg1[%c0_1, %c0_2] : memref<32x128xbf16, #tpu.memory_space<vmem>>, vector<32x128xbf16>
    %c0_3 = arith.constant 0 : index
    %c0_4 = arith.constant 0 : index
    %2 = vector.load %arg2[%c0_3, %c0_4] : memref<128x128xbf16, #tpu.memory_space<vmem>>, vector<128x128xbf16>
    %cst = arith.constant dense<0.000000e+00> : vector<32x128xf32>
    %3 = tpu.matmul %1, %2, %cst {dimension_numbers = #tpu.dot_dimension_numbers<[1], [0], [0], [1], [0, 0, 1, 1], [], []>} : vector<32x128xbf16>, vector<128x128xbf16>, vector<32x128xf32> -> vector<32x128xf32>
    %4 = arith.addf %0, %3 : vector<32x128xf32>
    %c0_5 = arith.constant 0 : index
    %c0_6 = arith.constant 0 : index
    %5 = vector.load %arg4[%c0_5, %c0_6] : memref<32x128xf32, #tpu.memory_space<vmem>>, vector<32x128xf32>
    tpu.vector_store %arg4[%c0_5, %c0_6], %4 {strides = array<i32>} : memref<32x128xf32, #tpu.memory_space<vmem>>, vector<32x128xf32>,
    return
  }
  func.func @transform_0(%arg0: i32) -> (i32, i32) {
    %c0_i32 = arith.constant 0 : i32
    %c0_i32_0 = arith.constant 0 : i32
    return %arg0, %c0_i32 : i32, i32
  }
  func.func @transform_1(%arg0: i32) -> (i32, i32) {
    %c0_i32 = arith.constant 0 : i32
    %c0_i32_0 = arith.constant 0 : i32
    %c0_i32_1 = arith.constant 0 : i32
    return %c0_i32, %c0_i32_0 : i32, i32
  }
  func.func @transform_2(%arg0: i32) -> (i32, i32) {
    %c0_i32 = arith.constant 0 : i32
    %c0_i32_0 = arith.constant 0 : i32
    return %arg0, %c0_i32 : i32, i32
  }
  func.func @transform_3(%arg0: i32) -> (i32, i32) {
    %c0_i32 = arith.constant 0 : i32
    %c0_i32_0 = arith.constant 0 : i32
    return %arg0, %c0_i32 : i32, i32
  }
}

module attributes {stable_mosaic.version = 11 : i64} {
  func.func @_convA_kernel(%arg0: i32, %arg1: memref<32x128xbf16, #tpu.memory_space<vmem>>, %arg2: memref<128x128xbf16, #tpu.memory_space<vmem>>, %arg3: memref<1x128xf32, #tpu.memory_space<vmem>>, %arg4: memref<32x128xbf16, #tpu.memory_space<vmem>>) attributes {dimension_semantics = [#tpu.dimension_semantics<parallel>], iteration_bounds = array<i64: 4>, scalar_prefetch = 0 : i64, scratch_operands = 0 : i64, tpu.core_type = #tpu.core_type<tc>, window_params = [{transform_indices = @transform_0, window_bounds = array<i64: 32, 128>}, {pipeline_mode = #tpu.pipeline_mode<synchronous>, transform_indices = @transform_1, window_bounds = array<i64: 128, 128>}, {pipeline_mode = #tpu.pipeline_mode<synchronous>, transform_indices = @transform_2, window_bounds = array<i64: 1, 128>}, {transform_indices = @transform_3, window_bounds = array<i64: 32, 128>}]} {
    %c0 = arith.constant 0 : index
    %c0_0 = arith.constant 0 : index
    %0 = vector.load %arg1[%c0, %c0_0] : memref<32x128xbf16, #tpu.memory_space<vmem>>, vector<32x128xbf16>
    %c0_1 = arith.constant 0 : index
    %c0_2 = arith.constant 0 : index
    %1 = vector.load %arg2[%c0_1, %c0_2] : memref<128x128xbf16, #tpu.memory_space<vmem>>, vector<128x128xbf16>
    %cst = arith.constant dense<0.000000e+00> : vector<32x128xf32>
    %2 = tpu.matmul %0, %1, %cst {dimension_numbers = #tpu.dot_dimension_numbers<[1], [0], [0], [1], [0, 0, 1, 1], [], []>} : vector<32x128xbf16>, vector<128x128xbf16>, vector<32x128xf32> -> vector<32x128xf32>
    %c0_3 = arith.constant 0 : index
    %c0_4 = arith.constant 0 : index
    %3 = vector.load %arg3[%c0_3, %c0_4] : memref<1x128xf32, #tpu.memory_space<vmem>>, vector<1x128xf32>
    %4 = vector.broadcast %3 : vector<1x128xf32> to vector<32x128xf32>
    %5 = arith.addf %2, %4 : vector<32x128xf32>
    %cst_5 = arith.constant 0.000000e+00 : f32
    %6 = vector.broadcast %cst_5 : f32 to vector<32x128xf32>
    %7 = arith.maximumf %5, %6 : vector<32x128xf32>
    %8 = arith.truncf %7 : vector<32x128xf32> to vector<32x128xbf16>
    %c0_6 = arith.constant 0 : index
    %c0_7 = arith.constant 0 : index
    %9 = vector.load %arg4[%c0_6, %c0_7] : memref<32x128xbf16, #tpu.memory_space<vmem>>, vector<32x128xbf16>
    tpu.vector_store %arg4[%c0_6, %c0_7], %8 {strides = array<i32>} : memref<32x128xbf16, #tpu.memory_space<vmem>>, vector<32x128xbf16>,
    return
  }
  func.func @transform_0(%arg0: i32) -> (i32, i32) {
    %c0_i32 = arith.constant 0 : i32
    %c0_i32_0 = arith.constant 0 : i32
    return %arg0, %c0_i32 : i32, i32
  }
  func.func @transform_1(%arg0: i32) -> (i32, i32) {
    %c0_i32 = arith.constant 0 : i32
    %c0_i32_0 = arith.constant 0 : i32
    %c0_i32_1 = arith.constant 0 : i32
    return %c0_i32, %c0_i32_0 : i32, i32
  }
  func.func @transform_2(%arg0: i32) -> (i32, i32) {
    %c0_i32 = arith.constant 0 : i32
    %c0_i32_0 = arith.constant 0 : i32
    %c0_i32_1 = arith.constant 0 : i32
    return %c0_i32, %c0_i32_0 : i32, i32
  }
  func.func @transform_3(%arg0: i32) -> (i32, i32) {
    %c0_i32 = arith.constant 0 : i32
    %c0_i32_0 = arith.constant 0 : i32
    return %arg0, %c0_i32 : i32, i32
  }
}

</mosaic_0001>

<bundles_post_ra>
// kernel: network_block_forward.4
= control target key start
LH: loop header
LB: loop body
LE: loop exit
PB: predicated region body
PF: predicated region fallthrough
CT: control target
= control target key end

     0   :  { %s785_s18 = smov 0   ;;  %s864_s0 = inlined_call_operand.vmem [shape: bf16[128,128], index: 0, kind: input, shape index: {}]   ;;  %s865_s1 = inlined_call_operand.vmem [shape: bf16[128,128], index: 1, kind: input, shape index: {}]   ;;  %s866_s2 = inlined_call_operand.vmem [shape: f32[1,128], index: 2, kind: input, shape index: {}]   ;;  %s867_s3 = inlined_call_operand.vmem [shape: bf16[128,128], index: 3, kind: input, shape index: {}]   ;;  %s868_s4 = inlined_call_operand.vmem [shape: bf16[128,128], index: 4, kind: output, shape index: {0}]   ;;  %s869_s5 = inlined_call_operand.vmem [shape: f32[128,128], index: 5, kind: output, shape index: {1}]  }
   0x1 LB: > { %s610_s19 = sadd.s32 4294967295, %s753_s18   ;;  %p614_p0 = scmp.ge.s32.totalorder %s753_s18, 1  ;;  %s753_s18 = sphi %s785_s18, %s16_s18  }
   0x2   : > { %p191_p1 = scmp.lt.s32.totalorder %s753_s18, 5 }
   0x4   : > { %p192_p2 = pnand %p614_p0, %p191_p1 }
   0x5   : > { %v729_v0 = vld [vmem:[%s865_s1] sm:$0xff] (!%p192_p2)   ;;  %s615_s22 = sshll.u32 (!%p192_p2), %s610_s19, 2  ;;  %v731_v2 = vld [vmem:[%s865_s1 + $0x8] sm:$0xff] (!%p192_p2)   ;;  %v733_v4 = vld [vmem:[%s865_s1 + $0x10] sm:$0xff] (!%p192_p2)  }
   0x6   : > { %195 = sbr.rel (%p192_p2) target bundleno = 260 (0x104), region = 36  ;;  %v730_v1 = vld [vmem:[%s867_s3] sm:$0xff] (!%p192_p2)   ;;  %p225_p3 = scmp.lt.s32.totalorder (!%p192_p2), %s615_s22, 15  ;;  %681 = vmatprep.subr.bf16.mxu0 (!%p192_p2), %v729_v0  ;;  %v732_v3 = vld [vmem:[%s867_s3 + $0x8] sm:$0xff] (!%p192_p2)   ;;  %v734_v5 = vld [vmem:[%s867_s3 + $0x10] sm:$0xff] (!%p192_p2)  }
   0x7   : > { %682 = vmatpush3.bf16.msra.mxu0 (!%p192_p2), %v729_v0  ;;  %701 = vmatprep.subr.bf16.mxu1 (!%p192_p2), %v730_v1  ;;  %v735_v6 = vld [vmem:[%s865_s1 + $0x18] sm:$0xff] (!%p192_p2)   ;;  %v737_v8 = vld [vmem:[%s865_s1 + $0x20] sm:$0xff] (!%p192_p2)   ;;  %v739_v11 = vld [vmem:[%s865_s1 + $0x28] sm:$0xff] (!%p192_p2)  }
   0x8   : > { %683 = vmatprep.subr.bf16.mxu0 (!%p192_p2), %v731_v2  ;;  %702 = vmatpush3.bf16.msra.mxu1 (!%p192_p2), %v730_v1  ;;  %v736_v7 = vld [vmem:[%s867_s3 + $0x18] sm:$0xff] (!%p192_p2)   ;;  %v738_v9 = vld [vmem:[%s867_s3 + $0x20] sm:$0xff] (!%p192_p2)   ;;  %v740_v12 = vld [vmem:[%s867_s3 + $0x28] sm:$0xff] (!%p192_p2)  }
   0x9   : > { %703 = vmatprep.subr.bf16.mxu1 (!%p192_p2), %v732_v3  ;;  %v741_v13 = vld [vmem:[%s865_s1 + $0x30] sm:$0xff] (!%p192_p2)   ;;  %v743_v15 = vld [vmem:[%s865_s1 + $0x38] sm:$0xff] (!%p192_p2)   ;;  %v621_v18 = vld [vmem:[%s866_s2] ss:$0 sm:$0xff] (!%p192_p2) }
   0xa   : > { %v742_v14 = vld [vmem:[%s867_s3 + $0x30] sm:$0xff] (!%p192_p2)   ;;  %v745_v16 = vld [vmem:[%s867_s3 + $0x38] sm:$0xff] (!%p192_p2)  }
   0xb   : > { %684 = vmatpush3.bf16.msra.mxu0 (!%p192_p2), %v731_v2 }
   0xc   : > { %685 = vmatprep.subr.bf16.mxu0 (!%p192_p2), %v733_v4  ;;  %704 = vmatpush3.bf16.msra.mxu1 (!%p192_p2), %v732_v3 }
   0xd   : > { %s871_s22 = smov (!%p225_p3, %s615_s22), 15  ;;  %705 = vmatprep.subr.bf16.mxu1 %v734_v5 }
   0xe   : > { %s616_s12 = sshll.u32 %s871_s22, 2  ;;  %s620_s9 = sshll.u32 %s871_s22, 3 }
   0xf   : > { %686 = vmatpush3.bf16.msra.mxu0 %v733_v4  ;;  %s228_s17 = scalar_lea.vmem %s864_s0, %s616_s12  ;;  %s240_s15 = scalar_lea.vmem %s869_s5, %s620_s9 }
  0x10   : > { %687 = vmatprep.subr.bf16.mxu0 %v735_v6  ;;  %706 = vmatpush3.bf16.msra.mxu1 %v734_v5  ;;  %v744_v10 = vld [vmem:[%s228_s17] sm:$0xff]   ;;  %v746_v17 = vld [vmem:[%s228_s17 + $0x8] sm:$0xff]   ;;  %s234_s19 = scalar_lea.vmem %s868_s4, %s616_s12 }
  0x11   : > { %707 = vmatprep.subr.bf16.mxu1 %v736_v7  ;;  %697 = vmatprep.mubr.bf16.mxu0 %v744_v10 }
  0x12   : > { %717 = vmatprep.mubr.bf16.mxu1 %v744_v10 }
  0x13   : > { %688 = vmatpush3.bf16.msra.mxu0 %v735_v6 }
  0x14   : > { %689 = vmatprep.subr.bf16.mxu0 %v737_v8  ;;  %708 = vmatpush3.bf16.msra.mxu1 %v736_v7 }
  0x15   : > { %709 = vmatprep.subr.bf16.mxu1 %v738_v9 }
  0x17   : > { %690 = vmatpush3.bf16.msra.mxu0 %v737_v8 }
  0x18   : > { %691 = vmatprep.subr.bf16.mxu0 %v739_v11  ;;  %710 = vmatpush3.bf16.msra.mxu1 %v738_v9 }
  0x19   : > { %711 = vmatprep.subr.bf16.mxu1 %v740_v12 }
  0x1b   : > { %692 = vmatpush3.bf16.msra.mxu0 %v739_v11 }
  0x1c   : > { %693 = vmatprep.subr.bf16.mxu0 %v741_v13  ;;  %712 = vmatpush3.bf16.msra.mxu1 %v740_v12 }
  0x1d   : > { %713 = vmatprep.subr.bf16.mxu1 %v742_v14 }
  0x1f   : > { %694 = vmatpush3.bf16.msra.mxu0 %v741_v13 }
  0x20   : > { %695 = vmatprep.subr.bf16.mxu0 %v743_v15  ;;  %714 = vmatpush3.bf16.msra.mxu1 %v742_v14 }
  0x21   : > { %715 = vmatprep.subr.bf16.mxu1 %v745_v16 }
  0x23   : > { %696 = vmatpush3.bf16.msra.mxu0 %v743_v15 }
  0x24   : > { %716 = vmatpush3.bf16.msra.mxu1 %v745_v16 }
  0x26   : > { %698 = vmatmul.mubr.bf16.vlgmr.msra.gmra.mrb[0].mxu0 %v746_v17 }
  0x27   : > { %718 = vmatmul.mubr.bf16.vlgmr.msra.gmra.mrb[0].mxu1 %v746_v17 }
  0xf9   : > { %v699_v19 = vpop.f32.mrb[0].mxu0 }
  0xfa   : > { %v373_v20 = vadd.f32 %v699_v19, %v621_v18  ;;  %v364_v21 = vpop.f32.mrb[1].mxu0  ;;  %v719_v22 = vpop.f32.mrb[0].mxu1 }
  0xfb   : > { %v365_v23 = vadd.f32 %v621_v18, %v364_v21  ;;  %v700_v24 = vpop.f32.mrb[2].mxu0  ;;  %518 = vst [vmem:[%s240_s15 + $0x10] sm:$0xff] %v719_v22  ;;  %v501_v25 = vpop.f32.mrb[1].mxu1 }
  0xfc   : > { %v376_v26 = vadd.f32 %v700_v24, %v621_v18  ;;  %v367_v27 = vpop.f32.mrb[3].mxu0  ;;  %516 = vst [vmem:[%s240_s15] sm:$0xff] %v501_v25  ;;  %v720_v28 = vpop.f32.mrb[2].mxu1  ;;  %v381_v31 = vmax.f32 %v373_v20, 0.0 }
  0xfd   : > { %v368_v29 = vadd.f32 %v621_v18, %v367_v27  ;;  %519 = vst [vmem:[%s240_s15 + $0x18] sm:$0xff] %v720_v28  ;;  %v504_v30 = vpop.f32.mrb[3].mxu1  ;;  %v379_v33 = vmax.f32 %v365_v23, 0.0 }
  0xfe   : > { %v382_v32 = vmax.f32 %v376_v26, 0.0  ;;  %517 = vst [vmem:[%s240_s15 + $0x8] sm:$0xff] %v504_v30 }
  0xff   : > { %v380_v34 = vmax.f32 %v368_v29, 0.0 }
 0x100   : > { %v658_v35 = vpack.c.bf16 %v382_v32, %v381_v31 }
 0x101   : > { %v653_v36 = vpack.c.bf16 %v380_v34, %v379_v33 }
 0x102   : > { %660 = vst [vmem:[%s234_s19 + $0x8] sm:$0xff] %v658_v35  }
 0x103   : > { %654 = vst [vmem:[%s234_s19] sm:$0xff] %v653_v36  }
 0x104 PF: > { %s16_s18 = sadd.s32 1, %s753_s18  }
 0x105   : > { %p13_p4 = scmp.ge.s32.totalorder %s16_s18, 6  }
 0x107   :  { %15 = sbr.rel (!%p13_p4) target bundleno = 1 (0x1), region = 78 }

// kernel: network_block_forward.5
= control target key start
LH: loop header
LB: loop body
LE: loop exit
PB: predicated region body
PF: predicated region fallthrough
CT: control target
= control target key end

     0   :  { %s505_s12 = smov 0   ;;  %s553_s0 = inlined_call_operand.vmem [shape: bf16[128,128], index: 0, kind: input, shape index: {}]   ;;  %s554_s1 = inlined_call_operand.vmem [shape: bf16[128,128], index: 1, kind: input, shape index: {}]   ;;  %s555_s2 = inlined_call_operand.vmem [shape: f32[128,128], index: 2, kind: input, shape index: {}, may-alias: {2,3}]   ;;  %s556_s3 = inlined_call_operand.vmem [shape: f32[128,128], index: 3, kind: output, shape index: {}, may-alias: {2,3}]  }
   0x1 LB: > { %s406_s13 = sadd.s32 4294967295, %s483_s12   ;;  %p410_p0 = scmp.ge.s32.totalorder %s483_s12, 1  ;;  %s483_s12 = sphi %s505_s12, %s13_s12  }
   0x2   : > { %p149_p1 = scmp.lt.s32.totalorder %s483_s12, 5 }
   0x4   : > { %p150_p2 = pnand %p410_p0, %p149_p1 }
   0x5   : > { %v467_v0 = vld [vmem:[%s554_s1] sm:$0xff] (!%p150_p2)   ;;  %s411_s16 = sshll.u32 (!%p150_p2), %s406_s13, 2  ;;  %v468_v1 = vld [vmem:[%s554_s1 + $0x8] sm:$0xff] (!%p150_p2)   ;;  %v469_v2 = vld [vmem:[%s554_s1 + $0x10] sm:$0xff] (!%p150_p2)  }
   0x6   : > { %153 = sbr.rel (%p150_p2) target bundleno = 256 (0x100), region = 32  ;;  %p179_p3 = scmp.lt.s32.totalorder (!%p150_p2), %s411_s16, 15  ;;  %439 = vmatprep.subr.bf16.mxu0 (!%p150_p2), %v467_v0  ;;  %v470_v3 = vld [vmem:[%s554_s1 + $0x18] sm:$0xff] (!%p150_p2)   ;;  %v471_v5 = vld [vmem:[%s554_s1 + $0x20] sm:$0xff] (!%p150_p2)   ;;  %v472_v6 = vld [vmem:[%s554_s1 + $0x28] sm:$0xff] (!%p150_p2)  }
   0x7   : > { %440 = vmatpush3.bf16.msra.mxu0 (!%p150_p2), %v467_v0  ;;  %v473_v7 = vld [vmem:[%s554_s1 + $0x30] sm:$0xff] (!%p150_p2)   ;;  %v474_v8 = vld [vmem:[%s554_s1 + $0x38] sm:$0xff] (!%p150_p2)  }
   0x8   : > { %441 = vmatprep.subr.bf16.mxu0 (!%p150_p2), %v468_v1 }
   0xb   : > { %442 = vmatpush3.bf16.msra.mxu0 (!%p150_p2), %v468_v1 }
   0xc   : > { %443 = vmatprep.subr.bf16.mxu0 (!%p150_p2), %v469_v2 }
   0xd   : > { %s558_s16 = smov (!%p179_p3, %s411_s16), 15 }
   0xe   : > { %s412_s21 = sshll.u32 %s558_s16, 2  ;;  %s414_s8 = sshll.u32 %s558_s16, 3 }
   0xf   : > { %s182_s24 = scalar_lea.vmem %s553_s0, %s412_s21  ;;  %444 = vmatpush3.bf16.msra.mxu0 %v469_v2  ;;  %s188_s11 = scalar_lea.vmem %s555_s2, %s414_s8 }
  0x10   : > { %v475_v4 = vld [vmem:[%s182_s24] sm:$0xff]   ;;  %445 = vmatprep.subr.bf16.mxu0 %v470_v3  ;;  %v476_v9 = vld [vmem:[%s182_s24 + $0x8] sm:$0xff]   ;;  %v199_v10 = vld [vmem:[%s188_s11 + $0x10] sm:$0xff]  ;;  %s194_s15 = scalar_lea.vmem %s556_s3, %s414_s8 }
  0x11   : > { %455 = vmatprep.mubr.bf16.mxu0 %v475_v4  ;;  %v197_v11 = vld [vmem:[%s188_s11] sm:$0xff]  ;;  %v200_v13 = vld [vmem:[%s188_s11 + $0x18] sm:$0xff]  ;;  %v198_v14 = vld [vmem:[%s188_s11 + $0x8] sm:$0xff] }
  0x13   : > { %446 = vmatpush3.bf16.msra.mxu0 %v470_v3 }
  0x14   : > { %447 = vmatprep.subr.bf16.mxu0 %v471_v5 }
  0x17   : > { %448 = vmatpush3.bf16.msra.mxu0 %v471_v5 }
  0x18   : > { %449 = vmatprep.subr.bf16.mxu0 %v472_v6 }
  0x1b   : > { %450 = vmatpush3.bf16.msra.mxu0 %v472_v6 }
  0x1c   : > { %451 = vmatprep.subr.bf16.mxu0 %v473_v7 }
  0x1f   : > { %452 = vmatpush3.bf16.msra.mxu0 %v473_v7 }
  0x20   : > { %453 = vmatprep.subr.bf16.mxu0 %v474_v8 }
  0x23   : > { %454 = vmatpush3.bf16.msra.mxu0 %v474_v8 }
  0x26   : > { %456 = vmatmul.mubr.bf16.vlgmr.msra.gmra.mrb[0].mxu0 %v476_v9 }
  0xf9   : > { %v457_v12 = vpop.f32.mrb[0].mxu0 }
  0xfa   : > { %v332_v15 = vadd.f32 %v457_v12, %v199_v10  ;;  %v315_v16 = vpop.f32.mrb[1].mxu0 }
  0xfb   : > { %v330_v17 = vadd.f32 %v315_v16, %v197_v11  ;;  %v458_v18 = vpop.f32.mrb[2].mxu0 }
  0xfc   : > { %v333_v19 = vadd.f32 %v458_v18, %v200_v13  ;;  %v318_v20 = vpop.f32.mrb[3].mxu0  ;;  %336 = vst [vmem:[%s194_s15 + $0x10] sm:$0xff] %v332_v15 }
  0xfd   : > { %v331_v21 = vadd.f32 %v318_v20, %v198_v14  ;;  %334 = vst [vmem:[%s194_s15] sm:$0xff] %v330_v17 }
  0xfe   : > { %337 = vst [vmem:[%s194_s15 + $0x18] sm:$0xff] %v333_v19 }
  0xff   : > { %335 = vst [vmem:[%s194_s15 + $0x8] sm:$0xff] %v331_v21 }
 0x100 PF: > { %s13_s12 = sadd.s32 1, %s483_s12  }
 0x101   : > { %p10_p4 = scmp.ge.s32.totalorder %s13_s12, 6  }
 0x103   :  { %12 = sbr.rel (!%p10_p4) target bundleno = 1 (0x1), region = 65 }

// kernel: network_block_forward.6
= control target key start
LH: loop header
LB: loop body
LE: loop exit
PB: predicated region body
PF: predicated region fallthrough
CT: control target
= control target key end

     0   :  { %s508_s12 = smov 0   ;;  %s559_s0 = inlined_call_operand.vmem [shape: bf16[128,128], index: 0, kind: input, shape index: {}]   ;;  %s560_s1 = inlined_call_operand.vmem [shape: bf16[128,128], index: 1, kind: input, shape index: {}]   ;;  %s561_s2 = inlined_call_operand.vmem [shape: f32[1,128], index: 2, kind: input, shape index: {}]   ;;  %s562_s3 = inlined_call_operand.vmem [shape: bf16[128,128], index: 3, kind: output, shape index: {}]  }
   0x1 LB: > { %s391_s13 = sadd.s32 4294967295, %s486_s12   ;;  %p395_p0 = scmp.ge.s32.totalorder %s486_s12, 1  ;;  %s486_s12 = sphi %s508_s12, %s13_s12  }
   0x2   : > { %p138_p1 = scmp.lt.s32.totalorder %s486_s12, 5 }
   0x4   : > { %p139_p2 = pnand %p395_p0, %p138_p1 }
   0x5   : > { %v470_v0 = vld [vmem:[%s560_s1] sm:$0xff] (!%p139_p2)   ;;  %s396_s16 = sshll.u32 (!%p139_p2), %s391_s13, 2  ;;  %v471_v1 = vld [vmem:[%s560_s1 + $0x8] sm:$0xff] (!%p139_p2)   ;;  %v472_v2 = vld [vmem:[%s560_s1 + $0x10] sm:$0xff] (!%p139_p2)  }
   0x6   : > { %142 = sbr.rel (%p139_p2) target bundleno = 260 (0x104), region = 32  ;;  %p163_p3 = scmp.lt.s32.totalorder (!%p139_p2), %s396_s16, 15  ;;  %442 = vmatprep.subr.bf16.mxu0 (!%p139_p2), %v470_v0  ;;  %v473_v3 = vld [vmem:[%s560_s1 + $0x18] sm:$0xff] (!%p139_p2)   ;;  %v474_v5 = vld [vmem:[%s560_s1 + $0x20] sm:$0xff] (!%p139_p2)   ;;  %v475_v6 = vld [vmem:[%s560_s1 + $0x28] sm:$0xff] (!%p139_p2)  }
   0x7   : > { %443 = vmatpush3.bf16.msra.mxu0 (!%p139_p2), %v470_v0  ;;  %v476_v7 = vld [vmem:[%s560_s1 + $0x30] sm:$0xff] (!%p139_p2)   ;;  %v477_v8 = vld [vmem:[%s560_s1 + $0x38] sm:$0xff] (!%p139_p2)   ;;  %v400_v10 = vld [vmem:[%s561_s2] ss:$0 sm:$0xff] (!%p139_p2) }
   0x8   : > { %444 = vmatprep.subr.bf16.mxu0 (!%p139_p2), %v471_v1 }
   0xb   : > { %445 = vmatpush3.bf16.msra.mxu0 (!%p139_p2), %v471_v1 }
   0xc   : > { %446 = vmatprep.subr.bf16.mxu0 (!%p139_p2), %v472_v2 }
   0xd   : > { %s564_s16 = smov (!%p163_p3, %s396_s16), 15 }
   0xe   : > { %s397_s21 = sshll.u32 %s564_s16, 2 }
   0xf   : > { %s166_s24 = scalar_lea.vmem %s559_s0, %s397_s21  ;;  %447 = vmatpush3.bf16.msra.mxu0 %v472_v2  ;;  %s172_s13 = scalar_lea.vmem %s562_s3, %s397_s21 }
  0x10   : > { %v478_v4 = vld [vmem:[%s166_s24] sm:$0xff]   ;;  %448 = vmatprep.subr.bf16.mxu0 %v473_v3  ;;  %v479_v9 = vld [vmem:[%s166_s24 + $0x8] sm:$0xff]  }
  0x11   : > { %458 = vmatprep.mubr.bf16.mxu0 %v478_v4 }
  0x13   : > { %449 = vmatpush3.bf16.msra.mxu0 %v473_v3 }
  0x14   : > { %450 = vmatprep.subr.bf16.mxu0 %v474_v5 }
  0x17   : > { %451 = vmatpush3.bf16.msra.mxu0 %v474_v5 }
  0x18   : > { %452 = vmatprep.subr.bf16.mxu0 %v475_v6 }
  0x1b   : > { %453 = vmatpush3.bf16.msra.mxu0 %v475_v6 }
  0x1c   : > { %454 = vmatprep.subr.bf16.mxu0 %v476_v7 }
  0x1f   : > { %455 = vmatpush3.bf16.msra.mxu0 %v476_v7 }
  0x20   : > { %456 = vmatprep.subr.bf16.mxu0 %v477_v8 }
  0x23   : > { %457 = vmatpush3.bf16.msra.mxu0 %v477_v8 }
  0x26   : > { %459 = vmatmul.mubr.bf16.vlgmr.msra.gmra.mrb[0].mxu0 %v479_v9 }
  0xf9   : > { %v460_v11 = vpop.f32.mrb[0].mxu0 }
  0xfa   : > { %v305_v12 = vadd.f32 %v460_v11, %v400_v10  ;;  %v296_v13 = vpop.f32.mrb[1].mxu0 }
  0xfb   : > { %v297_v14 = vadd.f32 %v400_v10, %v296_v13  ;;  %v461_v15 = vpop.f32.mrb[2].mxu0 }
  0xfc   : > { %v308_v16 = vadd.f32 %v461_v15, %v400_v10  ;;  %v299_v17 = vpop.f32.mrb[3].mxu0  ;;  %v313_v19 = vmax.f32 %v305_v12, 0.0 }
  0xfd   : > { %v300_v18 = vadd.f32 %v400_v10, %v299_v17  ;;  %v311_v21 = vmax.f32 %v297_v14, 0.0 }
  0xfe   : > { %v314_v20 = vmax.f32 %v308_v16, 0.0 }
  0xff   : > { %v312_v22 = vmax.f32 %v300_v18, 0.0 }
 0x100   : > { %v429_v23 = vpack.c.bf16 %v314_v20, %v313_v19 }
 0x101   : > { %v424_v24 = vpack.c.bf16 %v312_v22, %v311_v21 }
 0x102   : > { %431 = vst [vmem:[%s172_s13 + $0x8] sm:$0xff] %v429_v23  }
 0x103   : > { %425 = vst [vmem:[%s172_s13] sm:$0xff] %v424_v24  }
 0x104 PF: > { %s13_s12 = sadd.s32 1, %s486_s12  }
 0x105   : > { %p10_p4 = scmp.ge.s32.totalorder %s13_s12, 6  }
 0x107   :  { %12 = sbr.rel (!%p10_p4) target bundleno = 1 (0x1), region = 62 }

</bundles_post_ra>
